<compile_context>
chip_gen: v7x
topology: tpu7x:2x2x1
jax: 0.10.0
libtpu: 0.0.40
codegen_flags: <defaults>
</compile_context>

<pallas_src>
import jax
import jax.numpy as jnp
from jax.experimental import pallas as pl
from jax.experimental.pallas import tpu as pltpu

D_IN, D_H1, D_H2, D_OUT = 12, 144, 256, 66
BIG_TILE = 2048   # batch-tile ceiling (multiple of 8); ~12 MiB/step VMEM footprint
MIN_GRID = 4      # keep >= 4 grid steps when possible so v7x's 2 TCs both get work


def mlp_kernel(x_ref, w1_ref, b1_ref, w2_ref, b2_ref, w3_ref, b3_ref, o_ref):
    # Linear(12 -> 144) + ReLU
    h1 = jnp.dot(x_ref[...], w1_ref[...], preferred_element_type=jnp.float32)
    h1 = jnp.maximum(h1 + b1_ref[...], 0.0)
    # Linear(144 -> 256) + ReLU
    h2 = jnp.dot(h1, w2_ref[...], preferred_element_type=jnp.float32)
    h2 = jnp.maximum(h2 + b2_ref[...], 0.0)
    # Linear(256 -> 66); stored at true width (masked lane store, no extra pass)
    out = jnp.dot(h2, w3_ref[...], preferred_element_type=jnp.float32)
    o_ref[...] = (out + b3_ref[...]).astype(o_ref.dtype)


def _round_up(n, m):
    return (n + m - 1) // m * m


def net_forward(x, params):
    w1, b1, w2, b2, w3, b3 = params
    B = x.shape[0]

    # Batch tile: as large as possible for pipeline-overhead amortization,
    # capped so the grid keeps >= MIN_GRID steps (v7x megacore sharding),
    # always a multiple of the 8-row sublane granule.
    tb = max(8, min(BIG_TILE, _round_up(pl.cdiv(B, MIN_GRID), 8)))
    grid = (pl.cdiv(B, tb),)   # ragged last block: Pallas masks OOB rows

    def const_spec(shape):
        # Weights / biases: same block every grid step -> stay VMEM-resident.
        return pl.BlockSpec(shape, lambda i: (0,) * len(shape))

    flops = 2 * B * (D_IN * D_H1 + D_H1 * D_H2 + D_H2 * D_OUT)
    bytes_accessed = 4 * (
        x.size + B * D_OUT
        + w1.size + b1.size + w2.size + b2.size + w3.size + b3.size
    )

    return pl.pallas_call(
        mlp_kernel,
        out_shape=jax.ShapeDtypeStruct((B, D_OUT), jnp.float32),
        grid=grid,
        in_specs=[
            pl.BlockSpec((tb, D_IN), lambda i: (i, 0)),   # pipelined x tiles
            const_spec(w1.shape), const_spec(b1.shape),
            const_spec(w2.shape), const_spec(b2.shape),
            const_spec(w3.shape), const_spec(b3.shape),
        ],
        out_specs=pl.BlockSpec((tb, D_OUT), lambda i: (i, 0)),
        compiler_params=pltpu.CompilerParams(
            dimension_semantics=("parallel",),          # shard batch tiles over v7x's 2 TCs
            vmem_limit_bytes=48 * 1024 * 1024,          # clear v5e's 16 MiB scoped default
        ),
        cost_estimate=pl.CostEstimate(
            flops=flops, transcendentals=0, bytes_accessed=bytes_accessed),
    )(x, w1, b1, w2, b2, w3, b3)


def init_params(key):
    k = jax.random.split(key, 6)

    # nn.Linear-style uniform init U(-1/sqrt(fan_in), 1/sqrt(fan_in));
    # weights stored as (in_features, out_features) so y = x @ W + b.
    def lin(kw, kb, fan_in, fan_out):
        bound = 1.0 / jnp.sqrt(fan_in)
        w = jax.random.uniform(kw, (fan_in, fan_out), jnp.float32, -bound, bound)
        b = jax.random.uniform(kb, (1, fan_out), jnp.float32, -bound, bound)
        return w, b

    w1, b1 = lin(k[0], k[1], D_IN, D_H1)
    w2, b2 = lin(k[2], k[3], D_H1, D_H2)
    w3, b3 = lin(k[4], k[5], D_H2, D_OUT)
    return (w1, b1, w2, b2, w3, b3)


def reference_forward(x, params):
    w1, b1, w2, b2, w3, b3 = params
    h1 = jnp.maximum(x @ w1 + b1, 0.0)
    h2 = jnp.maximum(h1 @ w2 + b2, 0.0)
    return h2 @ w3 + b3


if __name__ == "__main__":
    key = jax.random.PRNGKey(0)
    kx, kp = jax.random.split(key)
    params = init_params(kp)

    # Small batch (single 8-row tile) ...
    B = 8
    x = jax.random.normal(kx, (B, D_IN), jnp.float32)
    out = jax.block_until_ready(net_forward(x, params))
    ref = reference_forward(x, params)
    assert out.shape == (B, D_OUT)
    assert jnp.allclose(out, ref, atol=1e-4, rtol=1e-4), "mismatch vs reference (B=8)"

    # ... and a multi-tile batch not divisible by the tile to exercise the
    # ragged boundary block (B=600 -> tb=152, grid=4, last block partial).
    B2 = 600
    x2 = jax.random.normal(jax.random.fold_in(kx, 1), (B2, D_IN), jnp.float32)
    out2 = jax.block_until_ready(net_forward(x2, params))
    ref2 = reference_forward(x2, params)
    assert out2.shape == (B2, D_OUT)
    assert jnp.allclose(out2, ref2, atol=1e-4, rtol=1e-4), "mismatch vs reference (B=600)"

    print("KERNEL_OK")
</pallas_src>

<mosaic_0001>
module attributes {stable_mosaic.version = 11 : i64} {
  func.func @mlp_kernel(%arg0: i32, %arg1: memref<8x12xf32, #tpu.memory_space<vmem>>, %arg2: memref<12x144xf32, #tpu.memory_space<vmem>>, %arg3: memref<1x144xf32, #tpu.memory_space<vmem>>, %arg4: memref<144x256xf32, #tpu.memory_space<vmem>>, %arg5: memref<1x256xf32, #tpu.memory_space<vmem>>, %arg6: memref<256x66xf32, #tpu.memory_space<vmem>>, %arg7: memref<1x66xf32, #tpu.memory_space<vmem>>, %arg8: memref<8x66xf32, #tpu.memory_space<vmem>>) attributes {dimension_semantics = [#tpu.dimension_semantics<parallel>], iteration_bounds = array<i64: 1>, scalar_prefetch = 0 : i64, scratch_operands = 0 : i64, tpu.core_type = #tpu.core_type<tc>, window_params = [{transform_indices = @transform_0, window_bounds = array<i64: 8, 12>}, {pipeline_mode = #tpu.pipeline_mode<synchronous>, transform_indices = @transform_1, window_bounds = array<i64: 12, 144>}, {pipeline_mode = #tpu.pipeline_mode<synchronous>, transform_indices = @transform_2, window_bounds = array<i64: 1, 144>}, {pipeline_mode = #tpu.pipeline_mode<synchronous>, transform_indices = @transform_3, window_bounds = array<i64: 144, 256>}, {pipeline_mode = #tpu.pipeline_mode<synchronous>, transform_indices = @transform_4, window_bounds = array<i64: 1, 256>}, {pipeline_mode = #tpu.pipeline_mode<synchronous>, transform_indices = @transform_5, window_bounds = array<i64: 256, 66>}, {pipeline_mode = #tpu.pipeline_mode<synchronous>, transform_indices = @transform_6, window_bounds = array<i64: 1, 66>}, {transform_indices = @transform_7, window_bounds = array<i64: 8, 66>}]} {
    %c0 = arith.constant 0 : index
    %c0_0 = arith.constant 0 : index
    %0 = vector.load %arg1[%c0, %c0_0] : memref<8x12xf32, #tpu.memory_space<vmem>>, vector<8x12xf32>
    %c0_1 = arith.constant 0 : index
    %c0_2 = arith.constant 0 : index
    %1 = vector.load %arg2[%c0_1, %c0_2] : memref<12x144xf32, #tpu.memory_space<vmem>>, vector<12x144xf32>
    %cst = arith.constant dense<0.000000e+00> : vector<8x144xf32>
    %2 = tpu.matmul %0, %1, %cst {dimension_numbers = #tpu.dot_dimension_numbers<[1], [0], [0], [1], [0, 0, 1, 1], [], []>} : vector<8x12xf32>, vector<12x144xf32>, vector<8x144xf32> -> vector<8x144xf32>
    %c0_3 = arith.constant 0 : index
    %c0_4 = arith.constant 0 : index
    %3 = vector.load %arg3[%c0_3, %c0_4] : memref<1x144xf32, #tpu.memory_space<vmem>>, vector<1x144xf32>
    %4 = vector.broadcast %3 : vector<1x144xf32> to vector<8x144xf32>
    %5 = arith.addf %2, %4 : vector<8x144xf32>
    %cst_5 = arith.constant 0.000000e+00 : f32
    %6 = vector.broadcast %cst_5 : f32 to vector<8x144xf32>
    %7 = arith.maximumf %5, %6 : vector<8x144xf32>
    %c0_6 = arith.constant 0 : index
    %c0_7 = arith.constant 0 : index
    %8 = vector.load %arg4[%c0_6, %c0_7] : memref<144x256xf32, #tpu.memory_space<vmem>>, vector<144x256xf32>
    %cst_8 = arith.constant dense<0.000000e+00> : vector<8x256xf32>
    %9 = tpu.matmul %7, %8, %cst_8 {dimension_numbers = #tpu.dot_dimension_numbers<[1], [0], [0], [1], [0, 0, 1, 1], [], []>} : vector<8x144xf32>, vector<144x256xf32>, vector<8x256xf32> -> vector<8x256xf32>
    %c0_9 = arith.constant 0 : index
    %c0_10 = arith.constant 0 : index
    %10 = vector.load %arg5[%c0_9, %c0_10] : memref<1x256xf32, #tpu.memory_space<vmem>>, vector<1x256xf32>
    %11 = vector.broadcast %10 : vector<1x256xf32> to vector<8x256xf32>
    %12 = arith.addf %9, %11 : vector<8x256xf32>
    %cst_11 = arith.constant 0.000000e+00 : f32
    %13 = vector.broadcast %cst_11 : f32 to vector<8x256xf32>
    %14 = arith.maximumf %12, %13 : vector<8x256xf32>
    %c0_12 = arith.constant 0 : index
    %c0_13 = arith.constant 0 : index
    %15 = vector.load %arg6[%c0_12, %c0_13] : memref<256x66xf32, #tpu.memory_space<vmem>>, vector<256x66xf32>
    %cst_14 = arith.constant dense<0.000000e+00> : vector<8x66xf32>
    %16 = tpu.matmul %14, %15, %cst_14 {dimension_numbers = #tpu.dot_dimension_numbers<[1], [0], [0], [1], [0, 0, 1, 1], [], []>} : vector<8x256xf32>, vector<256x66xf32>, vector<8x66xf32> -> vector<8x66xf32>
    %c0_15 = arith.constant 0 : index
    %c0_16 = arith.constant 0 : index
    %17 = vector.load %arg7[%c0_15, %c0_16] : memref<1x66xf32, #tpu.memory_space<vmem>>, vector<1x66xf32>
    %18 = vector.broadcast %17 : vector<1x66xf32> to vector<8x66xf32>
    %19 = arith.addf %16, %18 : vector<8x66xf32>
    %c0_17 = arith.constant 0 : index
    %c0_18 = arith.constant 0 : index
    %20 = vector.load %arg8[%c0_17, %c0_18] : memref<8x66xf32, #tpu.memory_space<vmem>>, vector<8x66xf32>
    tpu.vector_store %arg8[%c0_17, %c0_18], %19 {strides = array<i32>} : memref<8x66xf32, #tpu.memory_space<vmem>>, vector<8x66xf32>,
    return
  }
  func.func @transform_0(%arg0: i32) -> (i32, i32) {
    %c0_i32 = arith.constant 0 : i32
    %c0_i32_0 = arith.constant 0 : i32
    return %arg0, %c0_i32 : i32, i32
  }
  func.func @transform_1(%arg0: i32) -> (i32, i32) {
    %c0_i32 = arith.constant 0 : i32
    %c0_i32_0 = arith.constant 0 : i32
    %c0_i32_1 = arith.constant 0 : i32
    return %c0_i32, %c0_i32_0 : i32, i32
  }
  func.func @transform_2(%arg0: i32) -> (i32, i32) {
    %c0_i32 = arith.constant 0 : i32
    %c0_i32_0 = arith.constant 0 : i32
    %c0_i32_1 = arith.constant 0 : i32
    return %c0_i32, %c0_i32_0 : i32, i32
  }
  func.func @transform_3(%arg0: i32) -> (i32, i32) {
    %c0_i32 = arith.constant 0 : i32
    %c0_i32_0 = arith.constant 0 : i32
    %c0_i32_1 = arith.constant 0 : i32
    return %c0_i32, %c0_i32_0 : i32, i32
  }
  func.func @transform_4(%arg0: i32) -> (i32, i32) {
    %c0_i32 = arith.constant 0 : i32
    %c0_i32_0 = arith.constant 0 : i32
    %c0_i32_1 = arith.constant 0 : i32
    return %c0_i32, %c0_i32_0 : i32, i32
  }
  func.func @transform_5(%arg0: i32) -> (i32, i32) {
    %c0_i32 = arith.constant 0 : i32
    %c0_i32_0 = arith.constant 0 : i32
    %c0_i32_1 = arith.constant 0 : i32
    return %c0_i32, %c0_i32_0 : i32, i32
  }
  func.func @transform_6(%arg0: i32) -> (i32, i32) {
    %c0_i32 = arith.constant 0 : i32
    %c0_i32_0 = arith.constant 0 : i32
    %c0_i32_1 = arith.constant 0 : i32
    return %c0_i32, %c0_i32_0 : i32, i32
  }
  func.func @transform_7(%arg0: i32) -> (i32, i32) {
    %c0_i32 = arith.constant 0 : i32
    %c0_i32_0 = arith.constant 0 : i32
    return %arg0, %c0_i32 : i32, i32
  }
}

</mosaic_0001>

<bundles_post_ra>
// kernel: tpu_custom_call.1
= control target key start
LH: loop header
LB: loop body
LE: loop exit
PB: predicated region body
PF: predicated region fallthrough
CT: control target
= control target key end

     0   :  { %vm48_vm0 = vcmask 1043456   ;;  %vm519_vm1 = vmmov 1   ;;  %v520_v6 = vmov 0.0   ;;  %vm44_vm3 = vcmask 97280   ;;  %s802_s0 = inlined_call_operand.vmem [shape: f32[8,12], index: 0, kind: input, shape index: {}]   ;;  %s803_s1 = inlined_call_operand.vmem [shape: f32[12,144], index: 1, kind: input, shape index: {}]   ;;  %s804_s2 = inlined_call_operand.vmem [shape: f32[1,144], index: 2, kind: input, shape index: {}]   ;;  %s805_s3 = inlined_call_operand.vmem [shape: f32[144,256], index: 3, kind: input, shape index: {}]   ;;  %s806_s4 = inlined_call_operand.vmem [shape: f32[1,256], index: 4, kind: input, shape index: {}]   ;;  %s807_s5 = inlined_call_operand.vmem [shape: f32[256,66], index: 5, kind: input, shape index: {}]   ;;  %s808_s6 = inlined_call_operand.vmem [shape: f32[1,66], index: 6, kind: input, shape index: {}]   ;;  %s809_s7 = inlined_call_operand.hbm [shape: f32[8,66], index: 7, kind: output, shape index: {}]  }
   0x1   :  { %v29_v0 = vld [vmem:[%s803_s1 + $0x8] sm:$0xff]  ;;  %v31_v1 = vld [vmem:[%s803_s1 + $0x18] sm:$0xf]  ;;  %v28_v2 = vld [vmem:[%s803_s1] sm:$0xff]  ;;  %119 = vmatprep.mubr.f32.mxu0 %v520_v6 }
   0x2   :  { %v418_v3 = vpack.c.bf16 %v31_v1, %v29_v0  ;;  %vm419_vm2 = vmpackc.low %vm48_vm0, %vm519_vm1  ;;  %v30_v4 = vld [vmem:[%s803_s1 + $0x10] sm:$0xf]  ;;  %v27_v7 = vld [vmem:[%s802_s0] sm:$0xff] }
   0x3   :  { %v421_v5 = vpack.c.bf16 %v30_v4, %v28_v2  ;;  %v129_v8 = vld [vmem:[%s805_s3 + $0x8] sm:$0xff]  ;;  %v131_v9 = vld [vmem:[%s805_s3 + $0x18] sm:$0xff]  ;;  %v128_v10 = vld [vmem:[%s805_s3] sm:$0xff] }
   0x4   :  { %420 = vmatprep.subr.msk.bf16.mxu0 %vm419_vm2, %v418_v3  ;;  %v424_v11 = vpack.c.bf16 %v131_v9, %v129_v8  ;;  %v130_v12 = vld [vmem:[%s805_s3 + $0x10] sm:$0xff]  ;;  %v133_v13 = vld [vmem:[%s805_s3 + $0x28] sm:$0xff]  ;;  %v135_v14 = vld [vmem:[%s805_s3 + $0x38] sm:$0xff] }
   0x5   :  { %423 = vmatpush1.bf16.msk.msra.mxu0 %vm419_vm2, %v421_v5  ;;  %v426_v15 = vpack.c.bf16 %v130_v12, %v128_v10  ;;  %v428_v16 = vpack.c.bf16 %v135_v14, %v133_v13  ;;  %v132_v17 = vld [vmem:[%s805_s3 + $0x20] sm:$0xff]  ;;  %v134_v18 = vld [vmem:[%s805_s3 + $0x30] sm:$0xff]  ;;  %v137_v19 = vld [vmem:[%s805_s3 + $0x48] sm:$0xff] }
   0x6   :  { %425 = vmatprep.subr.bf16.mxu1 %v424_v11  ;;  %v139_v20 = vld [vmem:[%s805_s3 + $0x58] sm:$0xff]  ;;  %v430_v21 = vpack.c.bf16 %v134_v18, %v132_v17  ;;  %v136_v23 = vld [vmem:[%s805_s3 + $0x40] sm:$0xff]  ;;  %v138_v24 = vld [vmem:[%s805_s3 + $0x50] sm:$0xff] }
   0x7   :  { %427 = vmatpush1.bf16.msra.mxu1 %v426_v15  ;;  %v432_v22 = vpack.c.bf16 %v139_v20, %v137_v19  ;;  %v141_v25 = vld [vmem:[%s805_s3 + $0x68] sm:$0xff]  ;;  %v143_v26 = vld [vmem:[%s805_s3 + $0x78] sm:$0xff]  ;;  %v434_v27 = vpack.c.bf16 %v138_v24, %v136_v23  ;;  %v140_v29 = vld [vmem:[%s805_s3 + $0x60] sm:$0xff] }
   0x8   :  { %380 = vmatmul.mubr.msk.f32.vlgmr.msra.gmra.mrb[0].mxu0 %vm44_vm3, %v27_v7  ;;  %429 = vmatprep.subr.bf16.mxu1 %v428_v16  ;;  %v436_v28 = vpack.c.bf16 %v143_v26, %v141_v25  ;;  %v142_v30 = vld [vmem:[%s805_s3 + $0x70] sm:$0xff]  ;;  %v145_v31 = vld [vmem:[%s805_s3 + $0x88] sm:$0xff]  ;;  %v147_v32 = vld [vmem:[%s805_s3 + $0x98] sm:$0xff] }
   0xb   :  { %431 = vmatpush1.bf16.msra.mxu1 %v430_v21 }
   0xc   :  { %433 = vmatprep.subr.bf16.mxu1 %v432_v22 }
   0xd   :  { %12 = vsyncpa [#allocation3], 0  ;;  %v438_v33 = vpack.c.bf16 %v142_v30, %v140_v29  ;;  %v440_v34 = vpack.c.bf16 %v147_v32, %v145_v31  ;;  %v144_v35 = vld [vmem:[%s805_s3 + $0x80] sm:$0xff]  ;;  %v146_v36 = vld [vmem:[%s805_s3 + $0x90] sm:$0xff]  ;;  %vm176_vm4 = vcmask 130048   ;;  %s521_s21 = smov [#allocation2]  }
   0xe   :  { %v149_v37 = vld [vmem:[%s805_s3 + $0xa8] sm:$0xff]  ;;  %v151_v38 = vld [vmem:[%s805_s3 + $0xb8] sm:$0xff]  ;;  %v442_v39 = vpack.c.bf16 %v146_v36, %v144_v35  ;;  %v148_v41 = vld [vmem:[%s805_s3 + $0xa0] sm:$0xff]  ;;  %s370_s22 = sshll.u32 %s521_s21, 4  ;;  %vm362_vm5 = vcmask 539648   ;;  %s371_s22 = int_to_ptr.vmem [resolvable:$true] %s370_s22 }
   0xf   :  { %435 = vmatpush1.bf16.msra.mxu1 %v434_v27  ;;  %v444_v40 = vpack.c.bf16 %v151_v38, %v149_v37  ;;  %v150_v42 = vld [vmem:[%s805_s3 + $0xb0] sm:$0xff]  ;;  %v153_v43 = vld [vmem:[%s805_s3 + $0xc8] sm:$0xff]  ;;  %v155_v44 = vld [vmem:[%s805_s3 + $0xd8] sm:$0xff]  ;;  %v34_v37 = vlaneseq  ;;  %p500_p1 = scmp.lt.s32.totalorder %s371_s22, %s371_s22 }
  0x10   :  { %437 = vmatprep.subr.bf16.mxu1 %v436_v28  ;;  %v446_v45 = vpack.c.bf16 %v150_v42, %v148_v41  ;;  %v448_v46 = vpack.c.bf16 %v155_v44, %v153_v43  ;;  %v152_v47 = vld [vmem:[%s805_s3 + $0xc0] sm:$0xff]  ;;  %v154_v48 = vld [vmem:[%s805_s3 + $0xd0] sm:$0xff]  ;;  %v157_v49 = vld [vmem:[%s805_s3 + $0xe8] sm:$0xff] }
  0x11   :  { %v159_v50 = vld [vmem:[%s805_s3 + $0xf8] sm:$0xff]  ;;  %v450_v51 = vpack.c.bf16 %v154_v48, %v152_v47  ;;  %v156_v53 = vld [vmem:[%s805_s3 + $0xe0] sm:$0xff]  ;;  %v158_v54 = vld [vmem:[%s805_s3 + $0xf0] sm:$0xff]  ;;  %v35_v38 = vshrl.u32 %v34_v37, 7 }
  0x12   :  { %v452_v52 = vpack.c.bf16 %v159_v50, %v157_v49  ;;  %v454_v55 = vpack.c.bf16 %v158_v54, %v156_v53  ;;  %v161_v56 = vld [vmem:[%s805_s3 + $0x108] sm:$0xff]  ;;  %v163_v57 = vld [vmem:[%s805_s3 + $0x118] sm:$0xff]  ;;  %v160_v59 = vld [vmem:[%s805_s3 + $0x100] sm:$0xff] }
  0x13   :  { %439 = vmatpush1.bf16.msra.mxu1 %v438_v33  ;;  %v456_v58 = vpack.c.bf16 %v163_v57, %v161_v56  ;;  %v162_v60 = vld [vmem:[%s805_s3 + $0x110] sm:$0xff]  ;;  %v269_v62 = vld [vmem:[%s807_s5 + $0x80] sm:$0xff]  ;;  %v270_v63 = vld [vmem:[%s807_s5 + $0x88] sm:$0xff]  ;;  %v40_v41 = vsub.s32 1, %v35_v38 }
  0x14   :  { %441 = vmatprep.subr.bf16.mxu1 %v440_v34  ;;  %v458_v61 = vpack.c.bf16 %v162_v60, %v160_v59  ;;  %v253_v0 = vld [vmem:[%s807_s5] sm:$0xff]  ;;  %v460_v1 = vpack.c.bf16 %v270_v63, %v269_v62  ;;  %v254_v2 = vld [vmem:[%s807_s5 + $0x8] sm:$0xff]  ;;  %v271_v3 = vld [vmem:[%s807_s5 + $0x90] sm:$0xff] }
  0x15   :  { %v272_v4 = vld [vmem:[%s807_s5 + $0x98] sm:$0xff]  ;;  %v462_v5 = vpack.c.bf16 %v254_v2, %v253_v0  ;;  %v255_v7 = vld [vmem:[%s807_s5 + $0x10] sm:$0xff]  ;;  %v273_v9 = vld [vmem:[%s807_s5 + $0xa0] sm:$0xff] }
  0x16   :  { %v464_v6 = vpack.c.bf16 %v272_v4, %v271_v3  ;;  %v256_v8 = vld [vmem:[%s807_s5 + $0x18] sm:$0xff]  ;;  %461 = vmatprep.subr.bf16.mxu0 %v460_v1  ;;  %v274_v10 = vld [vmem:[%s807_s5 + $0xa8] sm:$0xff]  ;;  %v257_v13 = vld [vmem:[%s807_s5 + $0x20] sm:$0xff] }
  0x17   :  { %443 = vmatpush1.bf16.msra.mxu1 %v442_v39  ;;  %463 = vmatpush3.bf16.msra.mxu0 %v462_v5  ;;  %v466_v11 = vpack.c.bf16 %v256_v8, %v255_v7  ;;  %v468_v12 = vpack.c.bf16 %v274_v10, %v273_v9  ;;  %v258_v14 = vld [vmem:[%s807_s5 + $0x28] sm:$0xff]  ;;  %v275_v15 = vld [vmem:[%s807_s5 + $0xb0] sm:$0xff]  ;;  %v276_v16 = vld [vmem:[%s807_s5 + $0xb8] sm:$0xff]  ;;  %v36_v39 = vsub.s32 0, %v35_v38 }
  0x18   :  { %445 = vmatprep.subr.bf16.mxu1 %v444_v40  ;;  %465 = vmatprep.subr.bf16.mxu0 %v464_v6  ;;  %v470_v17 = vpack.c.bf16 %v258_v14, %v257_v13  ;;  %v472_v18 = vpack.c.bf16 %v276_v16, %v275_v15  ;;  %v259_v19 = vld [vmem:[%s807_s5 + $0x30] sm:$0xff]  ;;  %v260_v20 = vld [vmem:[%s807_s5 + $0x38] sm:$0xff]  ;;  %v277_v21 = vld [vmem:[%s807_s5 + $0xc0] sm:$0xff] }
  0x19   :  { %v278_v22 = vld [vmem:[%s807_s5 + $0xc8] sm:$0xff]  ;;  %v474_v23 = vpack.c.bf16 %v260_v20, %v259_v19  ;;  %v261_v25 = vld [vmem:[%s807_s5 + $0x40] sm:$0xff]  ;;  %v279_v27 = vld [vmem:[%s807_s5 + $0xd0] sm:$0xff] }
  0x1a   :  { %v476_v24 = vpack.c.bf16 %v278_v22, %v277_v21  ;;  %v262_v26 = vld [vmem:[%s807_s5 + $0x48] sm:$0xff]  ;;  %v280_v28 = vld [vmem:[%s807_s5 + $0xd8] sm:$0xff]  ;;  %v263_v31 = vld [vmem:[%s807_s5 + $0x50] sm:$0xff] }
  0x1b   :  { %447 = vmatpush1.bf16.msra.mxu1 %v446_v45  ;;  %467 = vmatpush3.bf16.msra.mxu0 %v466_v11  ;;  %v478_v29 = vpack.c.bf16 %v262_v26, %v261_v25  ;;  %v480_v30 = vpack.c.bf16 %v280_v28, %v279_v27  ;;  %v264_v32 = vld [vmem:[%s807_s5 + $0x58] sm:$0xff]  ;;  %v281_v33 = vld [vmem:[%s807_s5 + $0xe0] sm:$0xff]  ;;  %v282_v34 = vld [vmem:[%s807_s5 + $0xe8] sm:$0xff] }
  0x1c   :  { %449 = vmatprep.subr.bf16.mxu1 %v448_v46  ;;  %469 = vmatprep.subr.bf16.mxu0 %v468_v12  ;;  %v482_v35 = vpack.c.bf16 %v264_v32, %v263_v31  ;;  %v484_v36 = vpack.c.bf16 %v282_v34, %v281_v33  ;;  %v32_v40 = vld [vmem:[%s804_s2] sm:$0x3]  ;;  %v283_v53 = vld [vmem:[%s807_s5 + $0xf0] sm:$0xff]  ;;  %v284_v54 = vld [vmem:[%s807_s5 + $0xf8] sm:$0xff] }
  0x1d   :  { %v37_v42 = vrot.slane %v32_v40, %v36_v39  ;;  %v41_v43 = vrot.slane %v32_v40, %v40_v41  ;;  %v265_v50 = vld [vmem:[%s807_s5 + $0x60] sm:$0xff]  ;;  %v267_v56 = vld [vmem:[%s807_s5 + $0x70] sm:$0xff]  ;;  %v268_v57 = vld [vmem:[%s807_s5 + $0x78] sm:$0xff] }
  0x1e   :  { %v164_v59 = vld [vmem:[%s806_s4] sm:$0x3]  ;;  %s495_s4 = scalar_lea.vmem %s371_s22, 128 }
  0x1f   :  { %451 = vmatpush1.bf16.msra.mxu1 %v450_v51  ;;  %471 = vmatpush3.bf16.msra.mxu0 %v470_v17  ;;  %v266_v51 = vld [vmem:[%s807_s5 + $0x68] sm:$0xff]  ;;  %v169_v60 = vrot.slane %v164_v59, %v36_v39  ;;  %v382_v5 = vld [vmem:[%s808_s6] ss:$0 sm:$0xff]  ;;  %p496_p0 = scmp.ne.s32.totalorder %s371_s22, %s495_s4  ;;  %p501_p2 = scmp.lt.s32.totalorder %s495_s4, %s495_s4 }
  0x20   :  { %453 = vmatprep.subr.bf16.mxu1 %v452_v52  ;;  %473 = vmatprep.subr.bf16.mxu0 %v472_v18  ;;  %v486_v52 = vpack.c.bf16 %v266_v51, %v265_v50 }
  0x21   :  { %p502_p3 = por %p501_p2, %p500_p1 }
  0x23   :  { %455 = vmatpush1.bf16.msra.mxu1 %v454_v55  ;;  %475 = vmatpush3.bf16.msra.mxu0 %v474_v23  ;;  %v488_v55 = vpack.c.bf16 %v284_v54, %v283_v53  ;;  %p503_p4 = pnand %p502_p3, %p496_p0 }
  0x24   :  { %457 = vmatprep.subr.bf16.mxu1 %v456_v58  ;;  %477 = vmatprep.subr.bf16.mxu0 %v476_v24  ;;  %v490_v58 = vpack.c.bf16 %v268_v57, %v267_v56 }
  0x27   :  { %459 = vmatpush1.bf16.msra.mxu1 %v458_v61  ;;  %479 = vmatpush3.bf16.msra.mxu0 %v478_v29  ;;  %v173_v61 = vrot.slane %v164_v59, %v40_v41 }
  0x28   :  { %481 = vmatprep.subr.bf16.mxu0 %v480_v30 }
  0x2b   :  { %483 = vmatpush3.bf16.msra.mxu0 %v482_v35 }
  0x2c   :  { %485 = vmatprep.subr.bf16.mxu0 %v484_v36 }
  0x2f   :  { %487 = vmatpush3.bf16.msra.mxu0 %v486_v52 }
  0x30   :  { %489 = vmatprep.subr.bf16.mxu0 %v488_v55 }
  0x33   :  { %491 = vmatpush3.bf16.msra.mxu0 %v490_v58 }
  0xdb   :  { %v121_v44 = vpop.f32.mrb[0].mxu0 }
  0xdc   :  { %v122_v45 = vadd.f32 %v121_v44, %v37_v42  ;;  %v123_v46 = vpop.f32.mrb[1].mxu0 }
  0xdd   :  { %v124_v47 = vadd.f32 %v123_v46, %v41_v43 }
  0xde   :  { %v126_v49 = vmax.f32 %v122_v45, 0.0 }
  0xdf   :  { %v127_v48 = vmax.f32 %v124_v47, 0.0 }
  0xe1   :  { %381 = vmatprep.mubr.msk.f32.mxu1 %vm176_vm4, %v127_v48 }
  0xe2   :  { %245 = vmatmul.mubr.f32.vlgmr.msra.gmra.mrb[0].mxu1 %v126_v49 }
 0x1b5   :  { %v246_v62 = vpop.f32.mrb[0].mxu1 }
 0x1b6   :  { %v247_v63 = vadd.f32 %v246_v62, %v169_v60  ;;  %v248_v0 = vpop.f32.mrb[1].mxu1 }
 0x1b7   :  { %v249_v1 = vadd.f32 %v248_v0, %v173_v61 }
 0x1b8   :  { %v251_v3 = vmax.f32 %v247_v63, 0.0 }
 0x1b9   :  { %v252_v2 = vmax.f32 %v249_v1, 0.0 }
 0x1bb   :  { %356 = vmatprep.mubr.f32.mxu0 %v252_v2 }
 0x1bc   :  { %357 = vmatmul.mubr.f32.vlgmr.msra.gmra.mrb[2].mxu0 %v251_v3 }
 0x28f   :  { %v415_v4 = vpop.f32.mrb[2].mxu0 }
 0x290   :  { %v416_v6 = vpop.f32.mrb[3].mxu0 }
 0x291   :  { %v417_v7 = vadd.f32 %v416_v6, %v415_v4 }
 0x293   :  { %v359_v8 = vadd.f32 %v417_v7, %v382_v5 }
 0x295   :  { %363 = vst.msk [vmem:[#allocation2] sm:$0xff] %vm362_vm5, %v359_v8 }
 0x296   :  { %506 = shalt.err (!%p503_p4)
}
 0x297   :  { %s507_s25 = scalar_lea.hbm %s809_s7, 128 }
 0x298   :  { %p508_p5 = scmp.ne.s32.totalorder %s809_s7, %s507_s25  ;;  %p511_p6 = scmp.lt.u32.totalorder %s507_s25, %s809_s7 }
 0x29a   :  { %p513_p7 = pnand %p511_p6, %p508_p5 }
 0x29c   :  { %516 = shalt.err (!%p513_p7)
}
 0x29d   :  { %373 = dma.vmem_to_hbm [thread:$0]  %s371_s22, 128, %s809_s7, [#allocation3]  }
 0x29e   :  { %517 = dma.done.wait [#allocation3], 128  }
 0x29f   :  { %518 = vsyncadd [#allocation3], 4294967168 }
 0x2a0   :  { %377 = vsyncpa [#allocation3], 1 }

</bundles_post_ra>
